<compile_context>
chip_gen: v5e
topology: v5e:2x2
jax: 0.10.0
libtpu: 0.0.40
codegen_flags: <defaults>
</compile_context>

<pallas_src>
import functools

import jax
import jax.numpy as jnp
from jax.experimental import pallas as pl
from jax.experimental.pallas import tpu as pltpu

LN_EPS = 1e-5
LANE = 128
_SUBLANE = 8
# Smallest batch worth splitting into >= 2 grid steps (v7x has 2 TensorCores per chip;
# a single-step grid leaves one idle despite dimension_semantics=("parallel",)).
_MIN_SPLIT_ROWS = 256
# Scoped-VMEM request: ample for block_b=2048 double-buffered x/out + f32 intermediates,
# and still below v7x's 64 MiB physical VMEM per TensorCore (v5e/v6e have 128 MiB).
_VMEM_LIMIT_BYTES = 48 * 1024 * 1024


def _round_up(n, m):
    return (n + m - 1) // m * m


def _layernorm_fused(h, gamma, beta, true_width, *, via_mxu=False):
    # Single-pass LayerNorm over a zero-padded last axis.
    # Padded lanes hold exact zeros (zero-padded weight columns / biases), so the sums
    # over the padded width equal the sums over the true width; only the divisor
    # changes.  gamma/beta are zero on padded lanes, so padded outputs stay zero.
    inv_n = 1.0 / float(true_width)
    if via_mxu:
        # Offload the two lane-reductions to the (underused) MXU; the [128,128] ones
        # matrix broadcasts the sums across lanes, so no keepdims broadcast is needed.
        ones = jnp.ones((h.shape[-1], h.shape[-1]), dtype=jnp.float32)
        s1 = jnp.dot(h, ones, preferred_element_type=jnp.float32)
        s2 = jnp.dot(h * h, ones, preferred_element_type=jnp.float32)
    else:
        s1 = jnp.sum(h, axis=-1, keepdims=True)
        s2 = jnp.sum(h * h, axis=-1, keepdims=True)
    mu = s1 * inv_n
    var = jnp.maximum(s2 * inv_n - mu * mu, 0.0)
    return (h - mu) * jax.lax.rsqrt(var + LN_EPS) * gamma + beta


def poolnet_mlp_kernel(x_ref, w1_ref, w2_ref, w3_ref, vec_ref, o_ref, *,
                       true_h, ln_reduce_on_mxu):
    hp = w1_ref.shape[1]          # padded hidden width (128)
    pp = w3_ref.shape[1]          # padded prediction width (128)

    x = x_ref[...]
    if x.dtype != jnp.bfloat16:   # accept bf16 input directly; cast f32 in-VMEM
        x = x.astype(jnp.bfloat16)

    vec = vec_ref[...]            # f32 [8, 128] packed bias/gamma/beta
    b1, g1, be1 = vec[0:1, :hp], vec[1:2, :hp], vec[2:3, :hp]
    b2, g2, be2 = vec[3:4, :hp], vec[4:5, :hp], vec[5:6, :hp]
    b3 = vec[6:7, :pp]

    # Layer 1: Linear -> LayerNorm -> ReLU
    h = jnp.dot(x, w1_ref[...], preferred_element_type=jnp.float32) + b1
    h = jnp.maximum(
        _layernorm_fused(h, g1, be1, true_h, via_mxu=ln_reduce_on_mxu), 0.0)

    # Layer 2: Linear -> LayerNorm -> ReLU
    h = jnp.dot(h.astype(jnp.bfloat16), w2_ref[...],
                preferred_element_type=jnp.float32) + b2
    h = jnp.maximum(
        _layernorm_fused(h, g2, be2, true_h, via_mxu=ln_reduce_on_mxu), 0.0)

    # Layer 3: Linear (prediction head, no norm / act)
    out = jnp.dot(h.astype(jnp.bfloat16), w3_ref[...],
                  preferred_element_type=jnp.float32) + b3
    o_ref[...] = out.astype(o_ref.dtype)   # lane-dense [TB, 128] unmasked store


def poolnet_forward(x, params, mlp_hidden, dim_pred, *, block_b=2048,
                    out_dtype=jnp.bfloat16, return_padded=False,
                    ln_reduce_on_mxu=False):
    """x: [B, dim_in] (f32 or bf16).  Returns [B, dim_pred] in `out_dtype`."""
    w1, w2, w3, vec = params
    B, dim_in = x.shape
    HP = w1.shape[1]
    PP = w3.shape[1]

    # --- batch tiling ------------------------------------------------------
    # Pad the batch only to a sublane multiple (8), then split it as evenly as
    # possible into grid steps (minimal zero-row streaming).  Batches worth
    # splitting get an even number of >= 2 steps so both v7x TensorCores work.
    B8 = _round_up(B, _SUBLANE)
    TB_cap = max(_SUBLANE, _round_up(min(block_b, B8), _SUBLANE))
    n_tiles = pl.cdiv(B8, TB_cap)
    if B8 >= 2 * _MIN_SPLIT_ROWS:
        n_tiles = _round_up(max(n_tiles, 2), 2)
    TB = _round_up(pl.cdiv(B8, n_tiles), _SUBLANE)
    Bp = n_tiles * TB                    # padding <= ~8 rows per grid step
    if Bp != B:
        x = jnp.pad(x, ((0, Bp - B), (0, 0)))

    out_itemsize = jnp.dtype(out_dtype).itemsize
    flops = 2 * Bp * (dim_in * HP + HP * HP + HP * PP)
    bytes_accessed = (Bp * dim_in * x.dtype.itemsize + Bp * PP * out_itemsize
                      + (w1.size + w2.size + w3.size) * 2 + vec.size * 4)

    out_padded = pl.pallas_call(
        functools.partial(poolnet_mlp_kernel, true_h=mlp_hidden,
                          ln_reduce_on_mxu=ln_reduce_on_mxu),
        out_shape=jax.ShapeDtypeStruct((Bp, PP), out_dtype),
        grid=(n_tiles,),
        in_specs=[
            pl.BlockSpec((TB, dim_in), lambda i: (i, 0)),   # x: streamed per tile
            pl.BlockSpec((dim_in, HP), lambda i: (0, 0)),   # weights: VMEM-resident
            pl.BlockSpec((HP, HP), lambda i: (0, 0)),
            pl.BlockSpec((HP, PP), lambda i: (0, 0)),
            pl.BlockSpec(vec.shape, lambda i: (0, 0)),      # packed bias/gamma/beta
        ],
        out_specs=pl.BlockSpec((TB, PP), lambda i: (i, 0)),
        compiler_params=pltpu.CompilerParams(
            dimension_semantics=("parallel",),
            vmem_limit_bytes=_VMEM_LIMIT_BYTES,
        ),
        cost_estimate=pl.CostEstimate(flops=flops, transcendentals=0,
                                      bytes_accessed=bytes_accessed),
    )(x, w1, w2, w3, vec)

    if return_padded:
        # Consumers that can read the lane-padded buffer directly avoid a second
        # HBM pass; real rows are [:B], real lanes are [:dim_pred].
        return out_padded
    return out_padded[:B, :dim_pred]


def make_params(key, dim_in, mlp_hidden, dim_pred):
    """PyTorch-style Linear init, then zero-pad hidden/pred widths to 128 lanes.

    Returns (w1_bf16[dim_in,HP], w2_bf16[HP,HP], w3_bf16[HP,PP], vec_f32[8,VW]).
    vec rows: 0=b1 1=g1 2=be1 3=b2 4=g2 5=be2 6=b3 7=unused.
    """
    HP = _round_up(mlp_hidden, LANE)
    PP = _round_up(dim_pred, LANE)
    VW = max(HP, PP)

    ks = jax.random.split(key, 6)
    s1 = 1.0 / jnp.sqrt(dim_in)
    s2 = 1.0 / jnp.sqrt(mlp_hidden)
    w1 = jax.random.uniform(ks[0], (dim_in, mlp_hidden), jnp.float32, -s1, s1)
    b1 = jax.random.uniform(ks[1], (mlp_hidden,), jnp.float32, -s1, s1)
    w2 = jax.random.uniform(ks[2], (mlp_hidden, mlp_hidden), jnp.float32, -s2, s2)
    b2 = jax.random.uniform(ks[3], (mlp_hidden,), jnp.float32, -s2, s2)
    w3 = jax.random.uniform(ks[4], (mlp_hidden, dim_pred), jnp.float32, -s2, s2)
    b3 = jax.random.uniform(ks[5], (dim_pred,), jnp.float32, -s2, s2)
    g = jnp.ones((mlp_hidden,), jnp.float32)
    be = jnp.zeros((mlp_hidden,), jnp.float32)

    w1p = jnp.zeros((dim_in, HP), jnp.float32).at[:, :mlp_hidden].set(w1)
    w2p = jnp.zeros((HP, HP), jnp.float32).at[:mlp_hidden, :mlp_hidden].set(w2)
    w3p = jnp.zeros((HP, PP), jnp.float32).at[:mlp_hidden, :dim_pred].set(w3)

    vec = jnp.zeros((8, VW), jnp.float32)
    vec = vec.at[0, :mlp_hidden].set(b1)
    vec = vec.at[1, :mlp_hidden].set(g)
    vec = vec.at[2, :mlp_hidden].set(be)
    vec = vec.at[3, :mlp_hidden].set(b2)
    vec = vec.at[4, :mlp_hidden].set(g)
    vec = vec.at[5, :mlp_hidden].set(be)
    vec = vec.at[6, :dim_pred].set(b3)

    return (w1p.astype(jnp.bfloat16), w2p.astype(jnp.bfloat16),
            w3p.astype(jnp.bfloat16), vec)


def poolnet_reference(x, params, mlp_hidden, dim_pred):
    """Pure-JAX reference using the same bf16-MXU / f32-elementwise path."""
    w1, w2, w3, vec = params
    HP = w1.shape[1]
    PP = w3.shape[1]
    b1, g1, be1 = vec[0:1, :HP], vec[1:2, :HP], vec[2:3, :HP]
    b2, g2, be2 = vec[3:4, :HP], vec[4:5, :HP], vec[5:6, :HP]
    b3 = vec[6:7, :PP]

    h = jnp.dot(x.astype(jnp.bfloat16), w1, preferred_element_type=jnp.float32) + b1
    h = jnp.maximum(_layernorm_fused(h, g1, be1, mlp_hidden), 0.0)
    h = jnp.dot(h.astype(jnp.bfloat16), w2, preferred_element_type=jnp.float32) + b2
    h = jnp.maximum(_layernorm_fused(h, g2, be2, mlp_hidden), 0.0)
    out = jnp.dot(h.astype(jnp.bfloat16), w3, preferred_element_type=jnp.float32) + b3
    return out[:, :dim_pred]


if __name__ == "__main__":
    # args: dim_hidden=32, no_pi=2, no_po=2  -> dim_in = 32*2 + 32*2 = 128
    #       mlp_hidden=64, mlp_layer=3, norm_layer=LayerNorm, act_layer=ReLU
    dim_hidden, no_pi, no_po = 32, 2, 2
    mlp_hidden = 64
    dim_in = dim_hidden * no_pi + dim_hidden * no_po
    dim_pred = dim_hidden

    key = jax.random.PRNGKey(0)
    kx, kp, kx2 = jax.random.split(key, 3)
    params = make_params(kp, dim_in, mlp_hidden, dim_pred)

    ok = True

    # Test 1: small batch (single grid step).
    batch = 8
    x = jax.random.normal(kx, (batch, dim_in), jnp.float32)
    out = poolnet_forward(x, params, mlp_hidden, dim_pred)
    jax.block_until_ready(out)
    assert out.shape == (batch, dim_pred)
    ref = poolnet_reference(x, params, mlp_hidden, dim_pred)
    ref_q = ref.astype(jnp.bfloat16).astype(jnp.float32)
    ok &= bool(jnp.all(jnp.isfinite(out.astype(jnp.float32))))
    ok &= bool(jnp.allclose(out.astype(jnp.float32), ref_q, atol=2e-2, rtol=2e-2))

    # Test 2: non-divisible batch with a multi-step grid (exercises the
    # minimal-padding even-split tiling path).
    batch2 = 300
    x2 = jax.random.normal(kx2, (batch2, dim_in), jnp.float32)
    out2 = poolnet_forward(x2, params, mlp_hidden, dim_pred, block_b=128)
    jax.block_until_ready(out2)
    assert out2.shape == (batch2, dim_pred)
    ref2 = poolnet_reference(x2, params, mlp_hidden, dim_pred)
    ref2_q = ref2.astype(jnp.bfloat16).astype(jnp.float32)
    ok &= bool(jnp.all(jnp.isfinite(out2.astype(jnp.float32))))
    ok &= bool(jnp.allclose(out2.astype(jnp.float32), ref2_q, atol=2e-2, rtol=2e-2))

    if ok:
        print("KERNEL_OK")
</pallas_src>

<mosaic_0001>
module attributes {stable_mosaic.version = 11 : i64} {
  func.func @poolnet_mlp_kernel(%arg0: i32, %arg1: memref<8x128xf32, #tpu.memory_space<vmem>>, %arg2: memref<128x128xbf16, #tpu.memory_space<vmem>>, %arg3: memref<128x128xbf16, #tpu.memory_space<vmem>>, %arg4: memref<128x128xbf16, #tpu.memory_space<vmem>>, %arg5: memref<8x128xf32, #tpu.memory_space<vmem>>, %arg6: memref<8x128xbf16, #tpu.memory_space<vmem>>) attributes {dimension_semantics = [#tpu.dimension_semantics<parallel>], iteration_bounds = array<i64: 1>, scalar_prefetch = 0 : i64, scratch_operands = 0 : i64, tpu.core_type = #tpu.core_type<tc>, window_params = [{transform_indices = @transform_0, window_bounds = array<i64: 8, 128>}, {pipeline_mode = #tpu.pipeline_mode<synchronous>, transform_indices = @transform_1, window_bounds = array<i64: 128, 128>}, {pipeline_mode = #tpu.pipeline_mode<synchronous>, transform_indices = @transform_2, window_bounds = array<i64: 128, 128>}, {pipeline_mode = #tpu.pipeline_mode<synchronous>, transform_indices = @transform_3, window_bounds = array<i64: 128, 128>}, {pipeline_mode = #tpu.pipeline_mode<synchronous>, transform_indices = @transform_4, window_bounds = array<i64: 8, 128>}, {transform_indices = @transform_5, window_bounds = array<i64: 8, 128>}]} {
    %c0 = arith.constant 0 : index
    %c0_0 = arith.constant 0 : index
    %0 = vector.load %arg1[%c0, %c0_0] : memref<8x128xf32, #tpu.memory_space<vmem>>, vector<8x128xf32>
    %1 = arith.truncf %0 : vector<8x128xf32> to vector<8x128xbf16>
    %c0_1 = arith.constant 0 : index
    %c0_2 = arith.constant 0 : index
    %2 = vector.load %arg5[%c0_1, %c0_2] : memref<8x128xf32, #tpu.memory_space<vmem>>, vector<8x128xf32>
    %3 = vector.extract_strided_slice %2 {offsets = [0, 0], sizes = [1, 128], strides = [1, 1]} : vector<8x128xf32> to vector<1x128xf32>
    %4 = vector.extract_strided_slice %2 {offsets = [1, 0], sizes = [1, 128], strides = [1, 1]} : vector<8x128xf32> to vector<1x128xf32>
    %5 = vector.extract_strided_slice %2 {offsets = [2, 0], sizes = [1, 128], strides = [1, 1]} : vector<8x128xf32> to vector<1x128xf32>
    %6 = vector.extract_strided_slice %2 {offsets = [3, 0], sizes = [1, 128], strides = [1, 1]} : vector<8x128xf32> to vector<1x128xf32>
    %7 = vector.extract_strided_slice %2 {offsets = [4, 0], sizes = [1, 128], strides = [1, 1]} : vector<8x128xf32> to vector<1x128xf32>
    %8 = vector.extract_strided_slice %2 {offsets = [5, 0], sizes = [1, 128], strides = [1, 1]} : vector<8x128xf32> to vector<1x128xf32>
    %9 = vector.extract_strided_slice %2 {offsets = [6, 0], sizes = [1, 128], strides = [1, 1]} : vector<8x128xf32> to vector<1x128xf32>
    %c0_3 = arith.constant 0 : index
    %c0_4 = arith.constant 0 : index
    %10 = vector.load %arg2[%c0_3, %c0_4] : memref<128x128xbf16, #tpu.memory_space<vmem>>, vector<128x128xbf16>
    %cst = arith.constant dense<0.000000e+00> : vector<8x128xf32>
    %11 = tpu.matmul %1, %10, %cst {dimension_numbers = #tpu.dot_dimension_numbers<[1], [0], [0], [1], [0, 0, 1, 1], [], []>} : vector<8x128xbf16>, vector<128x128xbf16>, vector<8x128xf32> -> vector<8x128xf32>
    %12 = vector.broadcast %3 : vector<1x128xf32> to vector<8x128xf32>
    %13 = arith.addf %11, %12 : vector<8x128xf32>
    %cst_5 = arith.constant dense<0.000000e+00> : vector<8xf32>
    %14 = vector.multi_reduction <add>, %13, %cst_5 [1] : vector<8x128xf32> to vector<8xf32>
    %15 = vector.shape_cast %14 : vector<8xf32> to vector<8x1xf32>
    %16 = arith.mulf %13, %13 : vector<8x128xf32>
    %cst_6 = arith.constant dense<0.000000e+00> : vector<8xf32>
    %17 = vector.multi_reduction <add>, %16, %cst_6 [1] : vector<8x128xf32> to vector<8xf32>
    %18 = vector.shape_cast %17 : vector<8xf32> to vector<8x1xf32>
    %cst_7 = arith.constant 1.562500e-02 : f32
    %19 = vector.broadcast %cst_7 : f32 to vector<8x1xf32>
    %20 = arith.mulf %15, %19 : vector<8x1xf32>
    %cst_8 = arith.constant 1.562500e-02 : f32
    %21 = vector.broadcast %cst_8 : f32 to vector<8x1xf32>
    %22 = arith.mulf %18, %21 : vector<8x1xf32>
    %23 = arith.mulf %20, %20 : vector<8x1xf32>
    %24 = arith.subf %22, %23 : vector<8x1xf32>
    %cst_9 = arith.constant 0.000000e+00 : f32
    %25 = vector.broadcast %cst_9 : f32 to vector<8x1xf32>
    %26 = arith.maximumf %24, %25 : vector<8x1xf32>
    %27 = vector.broadcast %20 : vector<8x1xf32> to vector<8x128xf32>
    %28 = arith.subf %13, %27 : vector<8x128xf32>
    %cst_10 = arith.constant 9.99999974E-6 : f32
    %29 = vector.broadcast %cst_10 : f32 to vector<8x1xf32>
    %30 = arith.addf %26, %29 : vector<8x1xf32>
    %31 = math.rsqrt %30 : vector<8x1xf32>
    %32 = vector.broadcast %31 : vector<8x1xf32> to vector<8x128xf32>
    %33 = arith.mulf %28, %32 : vector<8x128xf32>
    %34 = vector.broadcast %4 : vector<1x128xf32> to vector<8x128xf32>
    %35 = arith.mulf %33, %34 : vector<8x128xf32>
    %36 = vector.broadcast %5 : vector<1x128xf32> to vector<8x128xf32>
    %37 = arith.addf %35, %36 : vector<8x128xf32>
    %cst_11 = arith.constant 0.000000e+00 : f32
    %38 = vector.broadcast %cst_11 : f32 to vector<8x128xf32>
    %39 = arith.maximumf %37, %38 : vector<8x128xf32>
    %40 = arith.truncf %39 : vector<8x128xf32> to vector<8x128xbf16>
    %c0_12 = arith.constant 0 : index
    %c0_13 = arith.constant 0 : index
    %41 = vector.load %arg3[%c0_12, %c0_13] : memref<128x128xbf16, #tpu.memory_space<vmem>>, vector<128x128xbf16>
    %cst_14 = arith.constant dense<0.000000e+00> : vector<8x128xf32>
    %42 = tpu.matmul %40, %41, %cst_14 {dimension_numbers = #tpu.dot_dimension_numbers<[1], [0], [0], [1], [0, 0, 1, 1], [], []>} : vector<8x128xbf16>, vector<128x128xbf16>, vector<8x128xf32> -> vector<8x128xf32>
    %43 = vector.broadcast %6 : vector<1x128xf32> to vector<8x128xf32>
    %44 = arith.addf %42, %43 : vector<8x128xf32>
    %cst_15 = arith.constant dense<0.000000e+00> : vector<8xf32>
    %45 = vector.multi_reduction <add>, %44, %cst_15 [1] : vector<8x128xf32> to vector<8xf32>
    %46 = vector.shape_cast %45 : vector<8xf32> to vector<8x1xf32>
    %47 = arith.mulf %44, %44 : vector<8x128xf32>
    %cst_16 = arith.constant dense<0.000000e+00> : vector<8xf32>
    %48 = vector.multi_reduction <add>, %47, %cst_16 [1] : vector<8x128xf32> to vector<8xf32>
    %49 = vector.shape_cast %48 : vector<8xf32> to vector<8x1xf32>
    %cst_17 = arith.constant 1.562500e-02 : f32
    %50 = vector.broadcast %cst_17 : f32 to vector<8x1xf32>
    %51 = arith.mulf %46, %50 : vector<8x1xf32>
    %cst_18 = arith.constant 1.562500e-02 : f32
    %52 = vector.broadcast %cst_18 : f32 to vector<8x1xf32>
    %53 = arith.mulf %49, %52 : vector<8x1xf32>
    %54 = arith.mulf %51, %51 : vector<8x1xf32>
    %55 = arith.subf %53, %54 : vector<8x1xf32>
    %cst_19 = arith.constant 0.000000e+00 : f32
    %56 = vector.broadcast %cst_19 : f32 to vector<8x1xf32>
    %57 = arith.maximumf %55, %56 : vector<8x1xf32>
    %58 = vector.broadcast %51 : vector<8x1xf32> to vector<8x128xf32>
    %59 = arith.subf %44, %58 : vector<8x128xf32>
    %cst_20 = arith.constant 9.99999974E-6 : f32
    %60 = vector.broadcast %cst_20 : f32 to vector<8x1xf32>
    %61 = arith.addf %57, %60 : vector<8x1xf32>
    %62 = math.rsqrt %61 : vector<8x1xf32>
    %63 = vector.broadcast %62 : vector<8x1xf32> to vector<8x128xf32>
    %64 = arith.mulf %59, %63 : vector<8x128xf32>
    %65 = vector.broadcast %7 : vector<1x128xf32> to vector<8x128xf32>
    %66 = arith.mulf %64, %65 : vector<8x128xf32>
    %67 = vector.broadcast %8 : vector<1x128xf32> to vector<8x128xf32>
    %68 = arith.addf %66, %67 : vector<8x128xf32>
    %cst_21 = arith.constant 0.000000e+00 : f32
    %69 = vector.broadcast %cst_21 : f32 to vector<8x128xf32>
    %70 = arith.maximumf %68, %69 : vector<8x128xf32>
    %71 = arith.truncf %70 : vector<8x128xf32> to vector<8x128xbf16>
    %c0_22 = arith.constant 0 : index
    %c0_23 = arith.constant 0 : index
    %72 = vector.load %arg4[%c0_22, %c0_23] : memref<128x128xbf16, #tpu.memory_space<vmem>>, vector<128x128xbf16>
    %cst_24 = arith.constant dense<0.000000e+00> : vector<8x128xf32>
    %73 = tpu.matmul %71, %72, %cst_24 {dimension_numbers = #tpu.dot_dimension_numbers<[1], [0], [0], [1], [0, 0, 1, 1], [], []>} : vector<8x128xbf16>, vector<128x128xbf16>, vector<8x128xf32> -> vector<8x128xf32>
    %74 = vector.broadcast %9 : vector<1x128xf32> to vector<8x128xf32>
    %75 = arith.addf %73, %74 : vector<8x128xf32>
    %76 = arith.truncf %75 : vector<8x128xf32> to vector<8x128xbf16>
    %c0_25 = arith.constant 0 : index
    %c0_26 = arith.constant 0 : index
    %77 = vector.load %arg6[%c0_25, %c0_26] : memref<8x128xbf16, #tpu.memory_space<vmem>>, vector<8x128xbf16>
    tpu.vector_store %arg6[%c0_25, %c0_26], %76 {strides = array<i32>} : memref<8x128xbf16, #tpu.memory_space<vmem>>, vector<8x128xbf16>,
    return
  }
  func.func @transform_0(%arg0: i32) -> (i32, i32) {
    %c0_i32 = arith.constant 0 : i32
    %c0_i32_0 = arith.constant 0 : i32
    return %arg0, %c0_i32 : i32, i32
  }
  func.func @transform_1(%arg0: i32) -> (i32, i32) {
    %c0_i32 = arith.constant 0 : i32
    %c0_i32_0 = arith.constant 0 : i32
    %c0_i32_1 = arith.constant 0 : i32
    return %c0_i32, %c0_i32_0 : i32, i32
  }
  func.func @transform_2(%arg0: i32) -> (i32, i32) {
    %c0_i32 = arith.constant 0 : i32
    %c0_i32_0 = arith.constant 0 : i32
    %c0_i32_1 = arith.constant 0 : i32
    return %c0_i32, %c0_i32_0 : i32, i32
  }
  func.func @transform_3(%arg0: i32) -> (i32, i32) {
    %c0_i32 = arith.constant 0 : i32
    %c0_i32_0 = arith.constant 0 : i32
    %c0_i32_1 = arith.constant 0 : i32
    return %c0_i32, %c0_i32_0 : i32, i32
  }
  func.func @transform_4(%arg0: i32) -> (i32, i32) {
    %c0_i32 = arith.constant 0 : i32
    %c0_i32_0 = arith.constant 0 : i32
    %c0_i32_1 = arith.constant 0 : i32
    return %c0_i32, %c0_i32_0 : i32, i32
  }
  func.func @transform_5(%arg0: i32) -> (i32, i32) {
    %c0_i32 = arith.constant 0 : i32
    %c0_i32_0 = arith.constant 0 : i32
    return %arg0, %c0_i32 : i32, i32
  }
}

</mosaic_0001>

<bundles_post_ra>
// kernel: tpu_custom_call.1
= control target key start
LH: loop header
LB: loop body
LE: loop exit
PB: predicated region body
PF: predicated region fallthrough
CT: control target
= control target key end

     0   :  { %10 = vsyncpa [#allocation3], 0  ;;  %s760_s0 = inlined_call_operand.hbm [shape: f32[8,128], index: 0, kind: input, shape index: {}]   ;;  %s761_s1 = inlined_call_operand.hbm [shape: bf16[128,128], index: 1, kind: input, shape index: {}]   ;;  %s762_s2 = inlined_call_operand.hbm [shape: bf16[128,128], index: 2, kind: input, shape index: {}]   ;;  %s763_s3 = inlined_call_operand.hbm [shape: bf16[128,128], index: 3, kind: input, shape index: {}]   ;;  %s764_s4 = inlined_call_operand.hbm [shape: f32[8,128], index: 4, kind: input, shape index: {}]   ;;  %s765_s5 = inlined_call_operand.hbm [shape: bf16[8,128], index: 5, kind: output, shape index: {}]  }
   0x1   :  { %11 = vsyncpa [#allocation6], 0 }
   0x2   :  { %12 = vsyncpa [#allocation9], 0  ;;  %s29_s20 = sshll.u32 %s761_s1, 4  ;;  %s30_s20 = int_to_ptr.hbm [resolvable:$true] %s29_s20 }
   0x3   :  { %13 = vsyncpa [#allocation4], 0  ;;  %s695_s21 = smov [#allocation5]   ;;  %s55_s25 = sshll.u32 %s763_s3, 4  ;;  %s56_s25 = int_to_ptr.hbm [resolvable:$true] %s55_s25 }
   0x4   :  { %s31_s22 = sshll.u32 %s695_s21, 4  ;;  %s696_s26 = smov 64   ;;  %s32_s22 = int_to_ptr.vmem [resolvable:$true] %s31_s22 }
   0x5   :  { %s697_s27 = smov 4   ;;  %s698_s28 = smov [#allocation8]  }
   0x6   :  { %37 = dma.hbm_to_vmem [thread:$0]  %s30_s20, 1024, %s32_s22, [#allocation6], %s696_s26, %s696_s26, %s697_s27  }
   0x7   :  { %s57_s29 = sshll.u32 %s698_s28, 4  ;;  %s19_s7 = sshll.u32 %s760_s0, 4  ;;  %s58_s29 = int_to_ptr.vmem [resolvable:$true] %s57_s29  ;;  %s20_s7 = int_to_ptr.hbm [resolvable:$true] %s19_s7 }
   0x8   :  { %63 = dma.hbm_to_vmem [thread:$0]  %s56_s25, 1024, %s58_s29, [#allocation9], %s696_s26, %s696_s26, %s697_s27  }
   0x9   :  { %s42_s9 = sshll.u32 %s762_s2, 4  ;;  %s699_s10 = smov [#allocation2]   ;;  %s43_s9 = int_to_ptr.hbm [resolvable:$true] %s42_s9 }
   0xa   :  { %s21_s11 = sshll.u32 %s699_s10, 4  ;;  %s700_s3 = smov [#allocation7]   ;;  %s22_s11 = int_to_ptr.vmem [resolvable:$true] %s21_s11 }
   0xb   :  { %24 = dma.hbm_to_vmem [thread:$0]  %s20_s7, 128, %s22_s11, [#allocation3]  }
   0xc   :  { %s44_s12 = sshll.u32 %s700_s3, 4  ;;  %s69_s15 = sshll.u32 %s764_s4, 4  ;;  %s45_s12 = int_to_ptr.vmem [resolvable:$true] %s44_s12  ;;  %s70_s15 = int_to_ptr.hbm [resolvable:$true] %s69_s15 }
   0xd   :  { %50 = dma.hbm_to_vmem [thread:$0]  %s43_s9, 1024, %s45_s12, [#allocation6], %s696_s26, %s696_s26, %s697_s27  }
   0xe   :  { %s701_s0 = smov [#allocation10]  }
   0xf   :  { %s71_s16 = sshll.u32 %s701_s0, 4  ;;  %s72_s16 = int_to_ptr.vmem [resolvable:$true] %s71_s16 }
  0x10   :  { %74 = dma.hbm_to_vmem [thread:$0]  %s70_s15, 128, %s72_s16, [#allocation9]  }
  0x11   :  { %687 = dma.done.wait [#allocation3], 128  }
  0x12   :  { %688 = vsyncadd [#allocation3], 4294967168 }
  0x13   :  { %689 = dma.done.wait [#allocation6], 2048  }
  0x14   :  { %690 = vsyncadd [#allocation6], 4294965248 }
  0x15   :  { %691 = dma.done.wait [#allocation9], 1152  }
  0x16   :  { %692 = vsyncadd [#allocation9], 4294966144  ;;  %v514_v0 = vld [vmem:[#allocation5 + $0x38] sm:$0xff]  ;;  %v513_v1 = vld [vmem:[#allocation5 + $0x30] sm:$0xff]  ;;  %s702_s2 = smov [#allocation11]   ;;  %s399_s19 = sshll.u32 %s765_s5, 4  ;;  %s400_s19 = int_to_ptr.hbm [resolvable:$true] %s399_s19 }
  0x17   :  { %163 = vmatpush.bf16.msra.mxu0 %v514_v0  ;;  %v512_v2 = vld [vmem:[#allocation5 + $0x28] sm:$0xff]  ;;  %v511_v3 = vld [vmem:[#allocation5 + $0x20] sm:$0xff]  ;;  %v510_v4 = vld [vmem:[#allocation5 + $0x18] sm:$0xff]  ;;  %s397_s4 = sshll.u32 %s702_s2, 4  ;;  %s398_s4 = int_to_ptr.vmem [resolvable:$true] %s397_s4 }
  0x18   :  { %v509_v5 = vld [vmem:[#allocation5 + $0x10] sm:$0xff]  ;;  %v508_v6 = vld [vmem:[#allocation5 + $0x8] sm:$0xff]  ;;  %v507_v7 = vld [vmem:[#allocation5] sm:$0xff] }
  0x19   :  { %v95_v8 = vld [vmem:[#allocation2] sm:$0xff]  ;;  %v748_v10 = vld [vmem:[#allocation10] sm:$0xff]  ;;  %v521_v17 = vld [vmem:[#allocation7 + $0x30] sm:$0xff] }
  0x1a   :  { %v96_v9 = vpack.c.bf16 %v95_v8, %v95_v8  ;;  %v114_v11 = vperm.slane %v748_v10, 0  ;;  %v522_v16 = vld [vmem:[#allocation7 + $0x38] sm:$0xff]  ;;  %v520_v18 = vld [vmem:[#allocation7 + $0x28] sm:$0xff]  ;;  %v519_v19 = vld [vmem:[#allocation7 + $0x20] sm:$0xff]  ;;  %v199_v39 = vperm.slane %v748_v10, 1  ;;  %v201_v42 = vperm.slane %v748_v10, 2 }
  0x1b   :  { %164 = vmatpush.bf16.msra.mxu0 %v513_v1  ;;  %270 = vmatpush.bf16.msra.mxu1 %v522_v16  ;;  %v518_v20 = vld [vmem:[#allocation7 + $0x18] sm:$0xff]  ;;  %v517_v21 = vld [vmem:[#allocation7 + $0x10] sm:$0xff]  ;;  %v516_v23 = vld [vmem:[#allocation7 + $0x8] sm:$0xff]  ;;  %v221_v47 = vperm.slane %v748_v10, 3 }
  0x1c   :  { %v515_v25 = vld [vmem:[#allocation7] sm:$0xff]  ;;  %v530_v52 = vld [vmem:[#allocation8 + $0x38] sm:$0xff]  ;;  %v529_v53 = vld [vmem:[#allocation8 + $0x30] sm:$0xff] }
  0x1d   :  { %377 = vmatpush.bf16.msra.mxu2 %v530_v52  ;;  %v528_v54 = vld [vmem:[#allocation8 + $0x28] sm:$0xff]  ;;  %v527_v55 = vld [vmem:[#allocation8 + $0x20] sm:$0xff]  ;;  %v526_v56 = vld [vmem:[#allocation8 + $0x18] sm:$0xff] }
  0x1e   :  { %v525_v57 = vld [vmem:[#allocation8 + $0x10] sm:$0xff]  ;;  %v524_v59 = vld [vmem:[#allocation8 + $0x8] sm:$0xff]  ;;  %v523_v61 = vld [vmem:[#allocation8] sm:$0xff] }
  0x1f   :  { %165 = vmatpush.bf16.msra.mxu0 %v512_v2  ;;  %271 = vmatpush.bf16.msra.mxu1 %v521_v17 }
  0x21   :  { %378 = vmatpush.bf16.msra.mxu2 %v529_v53 }
  0x23   :  { %166 = vmatpush.bf16.msra.mxu0 %v511_v3  ;;  %272 = vmatpush.bf16.msra.mxu1 %v520_v18 }
  0x25   :  { %379 = vmatpush.bf16.msra.mxu2 %v528_v54 }
  0x27   :  { %167 = vmatpush.bf16.msra.mxu0 %v510_v4  ;;  %273 = vmatpush.bf16.msra.mxu1 %v519_v19 }
  0x29   :  { %380 = vmatpush.bf16.msra.mxu2 %v527_v55 }
  0x2b   :  { %168 = vmatpush.bf16.msra.mxu0 %v509_v5  ;;  %274 = vmatpush.bf16.msra.mxu1 %v518_v20  ;;  %v328_v20 = vperm.slane %v748_v10, 6 }
  0x2d   :  { %381 = vmatpush.bf16.msra.mxu2 %v526_v56 }
  0x2f   :  { %169 = vmatpush.bf16.msra.mxu0 %v508_v6  ;;  %275 = vmatpush.bf16.msra.mxu1 %v517_v21 }
  0x31   :  { %382 = vmatpush.bf16.msra.mxu2 %v525_v57 }
  0x33   :  { %170 = vmatpush.bf16.msra.mxu0 %v507_v7  ;;  %276 = vmatpush.bf16.msra.mxu1 %v516_v23 }
  0x35   :  { %383 = vmatpush.bf16.msra.mxu2 %v524_v59 }
  0x36   :  { %171 = vmatmul.bf16.vlgmr.msra.gmra.mxu0 %v96_v9 }
  0x37   :  { %277 = vmatpush.bf16.msra.mxu1 %v515_v25 }
  0x39   :  { %384 = vmatpush.bf16.msra.mxu2 %v523_v61 }
  0xb3   :  { %v172_v12 = vpop.f32.mrf.mxu0 }
  0xb4   :  { %v173_v13 = vadd.f32 %v172_v12, %v114_v11  ;;  %v306_v12 = vperm.slane %v748_v10, 4 }
  0xb6   :  { %176 = vadd.xlane.f32.xlu0 %v173_v13  ;;  %v178_v15 = vmul.f32 %v173_v13, %v173_v13 }
  0xbb   :  { %v174_v14 = vpop.f32.mrf.mxu0 }
  0xbe   :  { %179 = vadd.xlane.f32.xlu0 %v178_v15  ;;  %v308_v15 = vperm.slane %v748_v10, 5 }
 0x129   :  { %v177_v22 = vpop.xlane.xlu0 %176 }
 0x12a   :  { %v181_v24 = vmul.f32 0.015625, %v177_v22 }
 0x12c   :  { %v183_v27 = vmul.f32 %v181_v24, %v181_v24  ;;  %v186_v38 = vsub.f32 %v173_v13, %v181_v24 }
 0x131   :  { %v180_v26 = vpop.xlane.xlu0 %179 }
 0x132   :  { %v182_v28 = vmul.f32 0.015625, %v180_v26 }
 0x134   :  { %v184_v29 = vsub.f32 %v182_v28, %v183_v27 }
 0x136   :  { %v185_v30 = vmax.f32 %v184_v29, 0.0 }
 0x138   :  { %v187_v31 = vadd.f32 1e-05, %v185_v30 }
 0x13a   :  { %539 = vrsqrt.f32 %v187_v31  ;;  %vm194_vm1 = vweird.f32 %v187_v31 }
 0x140   :  { %v540_v32 = vpop.eup %539 }
 0x141   :  { %v189_v33 = vmul.f32 %v540_v32, %v187_v31  ;;  %vm195_vm0 = vweird.f32 %v540_v32 }
 0x142   :  { %vm196_vm2 = vmor %vm194_vm1, %vm195_vm0 }
 0x143   :  { %v190_v34 = vmul.f32 %v540_v32, %v189_v33 }
 0x145   :  { %v191_v35 = vmul.f32 0.5, %v190_v34 }
 0x147   :  { %v192_v36 = vsub.f32 1.5, %v191_v35 }
 0x149   :  { %v193_v37 = vmul.f32 %v540_v32, %v192_v36 }
 0x14b   :  { %v197_v40 = vsel %vm196_vm2, %v540_v32, %v193_v37 }
 0x14c   :  { %v198_v41 = vmul.f32 %v197_v40, %v186_v38 }
 0x14e   :  { %v200_v43 = vmul.f32 %v199_v39, %v198_v41 }
 0x150   :  { %v202_v44 = vadd.f32 %v201_v42, %v200_v43 }
 0x152   :  { %v203_v45 = vmax.f32 %v202_v44, 0.0 }
 0x154   :  { %v204_v46 = vpack.c.bf16 %v203_v45, %v203_v45 }
 0x156   :  { %278 = vmatmul.bf16.vlgmr.msra.gmra.mxu1 %v204_v46 }
 0x1d3   :  { %v279_v48 = vpop.f32.mrf.mxu1 }
 0x1d4   :  { %v280_v49 = vadd.f32 %v279_v48, %v221_v47 }
 0x1d6   :  { %283 = vadd.xlane.f32.xlu1 %v280_v49  ;;  %v285_v51 = vmul.f32 %v280_v49, %v280_v49 }
 0x1db   :  { %v281_v50 = vpop.f32.mrf.mxu1 }
 0x1de   :  { %286 = vadd.xlane.f32.xlu1 %v285_v51 }
 0x249   :  { %v284_v58 = vpop.xlane.xlu1 %283 }
 0x24a   :  { %v288_v60 = vmul.f32 0.015625, %v284_v58 }
 0x24c   :  { %v290_v63 = vmul.f32 %v288_v60, %v288_v60  ;;  %v293_v11 = vsub.f32 %v280_v49, %v288_v60 }
 0x251   :  { %v287_v62 = vpop.xlane.xlu1 %286 }
 0x252   :  { %v289_v0 = vmul.f32 0.015625, %v287_v62 }
 0x254   :  { %v291_v1 = vsub.f32 %v289_v0, %v290_v63 }
 0x256   :  { %v292_v2 = vmax.f32 %v291_v1, 0.0 }
 0x258   :  { %v294_v3 = vadd.f32 1e-05, %v292_v2 }
 0x25a   :  { %541 = vrsqrt.f32 %v294_v3  ;;  %vm301_vm4 = vweird.f32 %v294_v3 }
 0x260   :  { %v542_v4 = vpop.eup %541 }
 0x261   :  { %v296_v5 = vmul.f32 %v542_v4, %v294_v3  ;;  %vm302_vm3 = vweird.f32 %v542_v4 }
 0x262   :  { %vm303_vm5 = vmor %vm301_vm4, %vm302_vm3 }
 0x263   :  { %v297_v6 = vmul.f32 %v542_v4, %v296_v5 }
 0x265   :  { %v298_v7 = vmul.f32 0.5, %v297_v6 }
 0x267   :  { %v299_v8 = vsub.f32 1.5, %v298_v7 }
 0x269   :  { %v300_v9 = vmul.f32 %v542_v4, %v299_v8 }
 0x26b   :  { %v304_v13 = vsel %vm303_vm5, %v542_v4, %v300_v9 }
 0x26c   :  { %v305_v14 = vmul.f32 %v304_v13, %v293_v11 }
 0x26e   :  { %v307_v16 = vmul.f32 %v306_v12, %v305_v14 }
 0x270   :  { %v309_v17 = vadd.f32 %v308_v15, %v307_v16 }
 0x272   :  { %v310_v18 = vmax.f32 %v309_v17, 0.0 }
 0x274   :  { %v311_v19 = vpack.c.bf16 %v310_v18, %v310_v18 }
 0x276   :  { %385 = vmatmul.bf16.vlgmr.msra.gmra.mxu2 %v311_v19 }
 0x2f9   :  { %v386_v21 = vpop.f32.mrf.mxu2 }
 0x2fa   :  { %v387_v22 = vadd.f32 %v386_v21, %v328_v20 }
 0x2fc   :  { %v390_v23 = vpack.c.bf16 %v387_v22, %v387_v22 }
 0x2fe   :  { %391 = vst [vmem:[#allocation11] sm:$0xf] %v390_v23 }
 0x2ff   :  { %402 = dma.vmem_to_hbm [thread:$0]  %s398_s4, 64, %s400_s19, [#allocation4]  }
 0x301   :  { %v388_v24 = vpop.f32.mrf.mxu2 }
 0x302   :  { %693 = dma.done.wait [#allocation4], 64  }
 0x303   :  { %694 = vsyncadd [#allocation4], 4294967232 }
 0x304   :  { %407 = vsyncpa [#allocation3], 1 }
 0x305   :  { %408 = vsyncpa [#allocation6], 1 }
 0x306   :  { %409 = vsyncpa [#allocation9], 1 }
 0x307   :  { %410 = vsyncpa [#allocation4], 1 }

</bundles_post_ra>
